<compile_context>
chip_gen: v7x
topology: tpu7x:2x2x1
jax: 0.10.0
libtpu: 0.0.40
codegen_flags: <defaults>
</compile_context>

<pallas_src>
import math

import jax
import jax.numpy as jnp
from jax import lax
from jax.experimental import pallas as pl
from jax.experimental.pallas import tpu as pltpu


# ----------------------------- kernel -------------------------------------- #

def make_encoder_layer_kernel(num_heads: int, d_k: int, seq_block: int,
                              seq_len: int, eps: float = 1e-5):
    """Fused kernel for one EncoderLayer on one (batch, seq-tile) grid cell."""
    inv_sqrt_dk = 1.0 / math.sqrt(d_k)
    inv_sqrt_2 = 1.0 / math.sqrt(2.0)
    TS, S = seq_block, seq_len
    bf16 = jnp.bfloat16

    def layer_norm(t, g, b):
        mu = jnp.mean(t, axis=-1, keepdims=True)
        var = jnp.mean((t - mu) ** 2, axis=-1, keepdims=True)
        return (t - mu) * lax.rsqrt(var + eps) * g + b

    def softmax_rows(scores):
        scores = scores - jnp.max(scores, axis=-1, keepdims=True)
        p = jnp.exp(scores)
        return p * pl.reciprocal(jnp.sum(p, axis=-1, keepdims=True), approx=True)

    def kernel(x_ref,
               wq_ref, bq_ref, wk_ref, bk_ref, wv_ref, bv_ref, wo_ref, bo_ref,
               g1_ref, be1_ref,
               w1_ref, bm1_ref, w2_ref, bm2_ref,
               g2_ref, be2_ref,
               o_ref):
        x_full = x_ref[0]                                    # (S, D) f32
        if TS == S:
            x_tile = x_full                                  # single seq tile
        else:
            row0 = pl.multiple_of(pl.program_id(1) * TS, TS)
            x_tile = x_ref[0, pl.ds(row0, TS), :]            # (TS, D) f32

        xf_b = x_full.astype(bf16)
        xt_b = x_tile.astype(bf16)

        # ---- Q/K/V projections (bf16 MXU, f32 accumulate) -------------------
        q = jnp.dot(xt_b, wq_ref[...], preferred_element_type=jnp.float32) + bq_ref[...]
        k = jnp.dot(xf_b, wk_ref[...], preferred_element_type=jnp.float32) + bk_ref[...]
        v = jnp.dot(xf_b, wv_ref[...], preferred_element_type=jnp.float32) + bv_ref[...]
        qb, kb, vb = q.astype(bf16), k.astype(bf16), v.astype(bf16)

        # ---- scaled dot-product attention -----------------------------------
        if num_heads == 1:
            # Contract on the last dim of both q and k: no explicit transpose.
            scores = lax.dot_general(
                qb, kb, (((1,), (1,)), ((), ())),
                preferred_element_type=jnp.float32) * inv_sqrt_dk       # (TS, S)
            p = softmax_rows(scores)
            ctx = jnp.dot(p.astype(bf16), vb,
                          preferred_element_type=jnp.float32)           # (TS, D)
        else:
            # Batched over heads: one MXU stream, lanes stay dense on d_k.
            qh = qb.reshape(TS, num_heads, d_k).transpose(1, 0, 2)      # (H, TS, dk)
            kh = kb.reshape(S, num_heads, d_k).transpose(1, 0, 2)       # (H, S, dk)
            vh = vb.reshape(S, num_heads, d_k).transpose(1, 0, 2)       # (H, S, dk)
            scores = lax.dot_general(
                qh, kh, (((2,), (2,)), ((0,), (0,))),
                preferred_element_type=jnp.float32) * inv_sqrt_dk       # (H, TS, S)
            p = softmax_rows(scores)
            ctx = lax.dot_general(
                p.astype(bf16), vh, (((2,), (1,)), ((0,), (0,))),
                preferred_element_type=jnp.float32)                     # (H, TS, dk)
            ctx = ctx.transpose(1, 0, 2).reshape(TS, num_heads * d_k)

        attn = jnp.dot(ctx.astype(bf16), wo_ref[...],
                       preferred_element_type=jnp.float32) + bo_ref[...]

        # ---- residual + LayerNorm 1 (f32) ------------------------------------
        x1 = layer_norm(x_tile + attn, g1_ref[...], be1_ref[...])

        # ---- MLP: Linear -> GELU(exact erf) -> Linear ------------------------
        h1 = jnp.dot(x1.astype(bf16), w1_ref[...],
                     preferred_element_type=jnp.float32) + bm1_ref[...]
        h1 = 0.5 * h1 * (1.0 + lax.erf(h1 * inv_sqrt_2))
        mlp = jnp.dot(h1.astype(bf16), w2_ref[...],
                      preferred_element_type=jnp.float32) + bm2_ref[...]

        # ---- residual + LayerNorm 2 (f32) ------------------------------------
        o_ref[0] = layer_norm(x1 + mlp, g2_ref[...], be2_ref[...]).astype(o_ref.dtype)

    return kernel


# ----------------------------- wrapper -------------------------------------- #

def encoder_layer_pallas(x, p, num_heads, *, seq_block=128):
    """Run one EncoderLayer. x: (B, S, D) f32. p: dict of f32 layer params."""
    B, S, D = x.shape
    Hd = p["w1"].shape[1]
    assert D % num_heads == 0
    d_k = D // num_heads

    # Sequence tile: 128-aligned when possible, else fall back to the full S.
    TS = seq_block
    if S % TS != 0 or TS % 8 != 0:
        TS = S
    n_s = S // TS

    # Cast weights once to bf16 (halves their HBM->VMEM traffic / footprint).
    bf = jnp.bfloat16
    wq, wk, wv, wo = (p[n].astype(bf) for n in ("wq", "wk", "wv", "wo"))
    w1, w2 = p["w1"].astype(bf), p["w2"].astype(bf)

    def full(shape):
        nd = len(shape)
        return pl.BlockSpec(shape, lambda b, s, _nd=nd: (0,) * _nd)

    in_specs = [
        pl.BlockSpec((1, S, D), lambda b, s: (b, 0, 0)),     # x (full sequence)
        full((D, D)), full((1, D)),                          # W_q, b_q
        full((D, D)), full((1, D)),                          # W_k, b_k
        full((D, D)), full((1, D)),                          # W_v, b_v
        full((D, D)), full((1, D)),                          # W_o, b_o
        full((1, D)), full((1, D)),                          # norm1 gamma, beta
        full((D, Hd)), full((1, Hd)),                        # mlp W1, b1
        full((Hd, D)), full((1, D)),                         # mlp W2, b2
        full((1, D)), full((1, D)),                          # norm2 gamma, beta
    ]

    # VMEM budget estimate (double-buffered BlockSpecs + f32 intermediates).
    w_bytes = 2 * (4 * D * D + 2 * D * Hd)                        # bf16 weights
    small_bytes = 4 * (10 * D + 2 * Hd)                           # biases + LN
    x_bytes = 4 * S * D * 2                                       # x block x2
    o_bytes = 4 * TS * D * 2                                      # out block x2
    act_bytes = 4 * (3 * S * D + num_heads * TS * S + TS * Hd + 6 * TS * D)
    est = 2 * w_bytes + small_bytes + x_bytes + o_bytes + act_bytes
    vmem_limit = int(min(96 * 2 ** 20, max(32 * 2 ** 20, 2 * est)))

    # Advisory cost estimate for XLA scheduling around the custom call.
    step_flops = (4 * TS * D * D + 4 * S * D * D
                  + 4 * TS * S * D + 4 * TS * D * Hd)
    ce = pl.CostEstimate(
        flops=int(B * n_s * step_flops),
        transcendentals=int(B * n_s * (num_heads * TS * S + TS * Hd + 3 * TS)),
        bytes_accessed=int(B * n_s * (4 * S * D + w_bytes) + 4 * B * S * D),
    )

    kernel = make_encoder_layer_kernel(num_heads, d_k, TS, S)

    return pl.pallas_call(
        kernel,
        out_shape=jax.ShapeDtypeStruct((B, S, D), jnp.float32),
        grid=(B, n_s),
        in_specs=in_specs,
        out_specs=pl.BlockSpec((1, TS, D), lambda b, s: (b, s, 0)),
        compiler_params=pltpu.CompilerParams(
            dimension_semantics=("parallel", "parallel"),
            vmem_limit_bytes=vmem_limit),
        cost_estimate=ce,
    )(x,
      wq, p["bq"], wk, p["bk"], wv, p["bv"], wo, p["bo"],
      p["g1"], p["be1"],
      w1, p["b1"], w2, p["b2"],
      p["g2"], p["be2"])


def transformer_encoder_pallas(x, layer_params, num_heads):
    for p in layer_params:
        x = encoder_layer_pallas(x, p, num_heads)
    return x


# --------------------------- pure-JAX reference ----------------------------- #

def layer_ref(x, p, num_heads):
    B, S, D = x.shape
    d_k = D // num_heads

    def linear(t, w, b):
        return t @ w + b[0]

    q = linear(x, p["wq"], p["bq"]).reshape(B, S, num_heads, d_k).transpose(0, 2, 1, 3)
    k = linear(x, p["wk"], p["bk"]).reshape(B, S, num_heads, d_k).transpose(0, 2, 1, 3)
    v = linear(x, p["wv"], p["bv"]).reshape(B, S, num_heads, d_k).transpose(0, 2, 1, 3)
    scores = jnp.einsum("bhqd,bhkd->bhqk", q, k) / math.sqrt(d_k)
    probs = jax.nn.softmax(scores, axis=-1)
    attn = jnp.einsum("bhqk,bhkd->bhqd", probs, v).transpose(0, 2, 1, 3).reshape(B, S, D)
    attn = linear(attn, p["wo"], p["bo"])

    def ln(t, g, b, eps=1e-5):
        mu = jnp.mean(t, axis=-1, keepdims=True)
        var = jnp.mean((t - mu) ** 2, axis=-1, keepdims=True)
        return (t - mu) / jnp.sqrt(var + eps) * g[0] + b[0]

    x1 = ln(x + attn, p["g1"], p["be1"])
    h1 = linear(x1, p["w1"], p["b1"])
    h1 = 0.5 * h1 * (1.0 + lax.erf(h1 / math.sqrt(2.0)))
    mlp = linear(h1, p["w2"], p["b2"])
    return ln(x1 + mlp, p["g2"], p["be2"])


# ------------------------------- params ------------------------------------- #

def init_layer_params(key, d_model, mlp_ratio=4):
    H = d_model * mlp_ratio
    ks = jax.random.split(key, 12)

    def lin(kw, kb, fan_in, fan_out):
        bound = 1.0 / math.sqrt(fan_in)
        w = jax.random.uniform(kw, (fan_in, fan_out), jnp.float32, -bound, bound)
        b = jax.random.uniform(kb, (1, fan_out), jnp.float32, -bound, bound)
        return w, b

    wq, bq = lin(ks[0], ks[1], d_model, d_model)
    wk, bk = lin(ks[2], ks[3], d_model, d_model)
    wv, bv = lin(ks[4], ks[5], d_model, d_model)
    wo, bo = lin(ks[6], ks[7], d_model, d_model)
    w1, b1 = lin(ks[8], ks[9], d_model, H)
    w2, b2 = lin(ks[10], ks[11], H, d_model)
    return dict(
        wq=wq, bq=bq, wk=wk, bk=bk, wv=wv, bv=bv, wo=wo, bo=bo,
        g1=jnp.ones((1, d_model), jnp.float32), be1=jnp.zeros((1, d_model), jnp.float32),
        w1=w1, b1=b1, w2=w2, b2=b2,
        g2=jnp.ones((1, d_model), jnp.float32), be2=jnp.zeros((1, d_model), jnp.float32),
    )


# -------------------------------- main -------------------------------------- #

if __name__ == "__main__":
    B, S, D = 2, 8, 32
    NUM_LAYERS = 2
    NUM_HEADS = 1          # EncoderLayer default
    MLP_RATIO = 4          # dropout is identity in eval mode

    key = jax.random.PRNGKey(0)
    kx, *layer_keys = jax.random.split(key, NUM_LAYERS + 1)
    x = jax.random.normal(kx, (B, S, D), jnp.float32)
    params = [init_layer_params(k, D, MLP_RATIO) for k in layer_keys]

    out = transformer_encoder_pallas(x, params, NUM_HEADS)
    out = jax.block_until_ready(out)

    # pure-JAX f32 reference check (kernel matmuls run in bf16 with f32
    # accumulation, so tolerances are bf16-level rather than 1e-4).
    ref = x
    for p in params:
        ref = layer_ref(ref, p, NUM_HEADS)
    assert out.shape == (B, S, D)
    max_err = float(jnp.max(jnp.abs(out - ref)))
    assert jnp.allclose(out, ref, atol=5e-2, rtol=5e-2), \
        f"mismatch vs reference (max abs err {max_err})"

    print("KERNEL_OK")
</pallas_src>

<mosaic_0001>
module attributes {stable_mosaic.version = 11 : i64} {
  func.func @kernel(%arg0: i32, %arg1: i32, %arg2: memref<1x8x32xf32, #tpu.memory_space<vmem>>, %arg3: memref<32x32xbf16, #tpu.memory_space<vmem>>, %arg4: memref<1x32xf32, #tpu.memory_space<vmem>>, %arg5: memref<32x32xbf16, #tpu.memory_space<vmem>>, %arg6: memref<1x32xf32, #tpu.memory_space<vmem>>, %arg7: memref<32x32xbf16, #tpu.memory_space<vmem>>, %arg8: memref<1x32xf32, #tpu.memory_space<vmem>>, %arg9: memref<32x32xbf16, #tpu.memory_space<vmem>>, %arg10: memref<1x32xf32, #tpu.memory_space<vmem>>, %arg11: memref<1x32xf32, #tpu.memory_space<vmem>>, %arg12: memref<1x32xf32, #tpu.memory_space<vmem>>, %arg13: memref<32x128xbf16, #tpu.memory_space<vmem>>, %arg14: memref<1x128xf32, #tpu.memory_space<vmem>>, %arg15: memref<128x32xbf16, #tpu.memory_space<vmem>>, %arg16: memref<1x32xf32, #tpu.memory_space<vmem>>, %arg17: memref<1x32xf32, #tpu.memory_space<vmem>>, %arg18: memref<1x32xf32, #tpu.memory_space<vmem>>, %arg19: memref<1x8x32xf32, #tpu.memory_space<vmem>>) attributes {dimension_semantics = [#tpu.dimension_semantics<parallel>, #tpu.dimension_semantics<parallel>], iteration_bounds = array<i64: 2, 1>, scalar_prefetch = 0 : i64, scratch_operands = 0 : i64, tpu.core_type = #tpu.core_type<tc>, window_params = [{transform_indices = @transform_0, window_bounds = array<i64: 1, 8, 32>}, {pipeline_mode = #tpu.pipeline_mode<synchronous>, transform_indices = @transform_1, window_bounds = array<i64: 32, 32>}, {pipeline_mode = #tpu.pipeline_mode<synchronous>, transform_indices = @transform_2, window_bounds = array<i64: 1, 32>}, {pipeline_mode = #tpu.pipeline_mode<synchronous>, transform_indices = @transform_3, window_bounds = array<i64: 32, 32>}, {pipeline_mode = #tpu.pipeline_mode<synchronous>, transform_indices = @transform_4, window_bounds = array<i64: 1, 32>}, {pipeline_mode = #tpu.pipeline_mode<synchronous>, transform_indices = @transform_5, window_bounds = array<i64: 32, 32>}, {pipeline_mode = #tpu.pipeline_mode<synchronous>, transform_indices = @transform_6, window_bounds = array<i64: 1, 32>}, {pipeline_mode = #tpu.pipeline_mode<synchronous>, transform_indices = @transform_7, window_bounds = array<i64: 32, 32>}, {pipeline_mode = #tpu.pipeline_mode<synchronous>, transform_indices = @transform_8, window_bounds = array<i64: 1, 32>}, {pipeline_mode = #tpu.pipeline_mode<synchronous>, transform_indices = @transform_9, window_bounds = array<i64: 1, 32>}, {pipeline_mode = #tpu.pipeline_mode<synchronous>, transform_indices = @transform_10, window_bounds = array<i64: 1, 32>}, {pipeline_mode = #tpu.pipeline_mode<synchronous>, transform_indices = @transform_11, window_bounds = array<i64: 32, 128>}, {pipeline_mode = #tpu.pipeline_mode<synchronous>, transform_indices = @transform_12, window_bounds = array<i64: 1, 128>}, {pipeline_mode = #tpu.pipeline_mode<synchronous>, transform_indices = @transform_13, window_bounds = array<i64: 128, 32>}, {pipeline_mode = #tpu.pipeline_mode<synchronous>, transform_indices = @transform_14, window_bounds = array<i64: 1, 32>}, {pipeline_mode = #tpu.pipeline_mode<synchronous>, transform_indices = @transform_15, window_bounds = array<i64: 1, 32>}, {pipeline_mode = #tpu.pipeline_mode<synchronous>, transform_indices = @transform_16, window_bounds = array<i64: 1, 32>}, {transform_indices = @transform_17, window_bounds = array<i64: 1, 8, 32>}]} {
    %c0 = arith.constant 0 : index
    %c0_0 = arith.constant 0 : index
    %c0_1 = arith.constant 0 : index
    %0 = vector.load %arg2[%c0, %c0_0, %c0_1] : memref<1x8x32xf32, #tpu.memory_space<vmem>>, vector<1x8x32xf32>
    %1 = vector.shape_cast %0 : vector<1x8x32xf32> to vector<8x32xf32>
    %2 = arith.truncf %1 : vector<8x32xf32> to vector<8x32xbf16>
    %3 = arith.truncf %1 : vector<8x32xf32> to vector<8x32xbf16>
    %c0_2 = arith.constant 0 : index
    %c0_3 = arith.constant 0 : index
    %4 = vector.load %arg3[%c0_2, %c0_3] : memref<32x32xbf16, #tpu.memory_space<vmem>>, vector<32x32xbf16>
    %cst = arith.constant dense<0.000000e+00> : vector<8x32xf32>
    %5 = tpu.matmul %3, %4, %cst {dimension_numbers = #tpu.dot_dimension_numbers<[1], [0], [0], [1], [0, 0, 1, 1], [], []>} : vector<8x32xbf16>, vector<32x32xbf16>, vector<8x32xf32> -> vector<8x32xf32>
    %c0_4 = arith.constant 0 : index
    %c0_5 = arith.constant 0 : index
    %6 = vector.load %arg4[%c0_4, %c0_5] : memref<1x32xf32, #tpu.memory_space<vmem>>, vector<1x32xf32>
    %7 = vector.broadcast %6 : vector<1x32xf32> to vector<8x32xf32>
    %8 = arith.addf %5, %7 : vector<8x32xf32>
    %c0_6 = arith.constant 0 : index
    %c0_7 = arith.constant 0 : index
    %9 = vector.load %arg5[%c0_6, %c0_7] : memref<32x32xbf16, #tpu.memory_space<vmem>>, vector<32x32xbf16>
    %cst_8 = arith.constant dense<0.000000e+00> : vector<8x32xf32>
    %10 = tpu.matmul %2, %9, %cst_8 {dimension_numbers = #tpu.dot_dimension_numbers<[1], [0], [0], [1], [0, 0, 1, 1], [], []>} : vector<8x32xbf16>, vector<32x32xbf16>, vector<8x32xf32> -> vector<8x32xf32>
    %c0_9 = arith.constant 0 : index
    %c0_10 = arith.constant 0 : index
    %11 = vector.load %arg6[%c0_9, %c0_10] : memref<1x32xf32, #tpu.memory_space<vmem>>, vector<1x32xf32>
    %12 = vector.broadcast %11 : vector<1x32xf32> to vector<8x32xf32>
    %13 = arith.addf %10, %12 : vector<8x32xf32>
    %c0_11 = arith.constant 0 : index
    %c0_12 = arith.constant 0 : index
    %14 = vector.load %arg7[%c0_11, %c0_12] : memref<32x32xbf16, #tpu.memory_space<vmem>>, vector<32x32xbf16>
    %cst_13 = arith.constant dense<0.000000e+00> : vector<8x32xf32>
    %15 = tpu.matmul %2, %14, %cst_13 {dimension_numbers = #tpu.dot_dimension_numbers<[1], [0], [0], [1], [0, 0, 1, 1], [], []>} : vector<8x32xbf16>, vector<32x32xbf16>, vector<8x32xf32> -> vector<8x32xf32>
    %c0_14 = arith.constant 0 : index
    %c0_15 = arith.constant 0 : index
    %16 = vector.load %arg8[%c0_14, %c0_15] : memref<1x32xf32, #tpu.memory_space<vmem>>, vector<1x32xf32>
    %17 = vector.broadcast %16 : vector<1x32xf32> to vector<8x32xf32>
    %18 = arith.addf %15, %17 : vector<8x32xf32>
    %19 = arith.truncf %8 : vector<8x32xf32> to vector<8x32xbf16>
    %20 = arith.truncf %13 : vector<8x32xf32> to vector<8x32xbf16>
    %21 = arith.truncf %18 : vector<8x32xf32> to vector<8x32xbf16>
    %cst_16 = arith.constant dense<0.000000e+00> : vector<8x8xf32>
    %22 = tpu.matmul %19, %20, %cst_16 {dimension_numbers = #tpu.dot_dimension_numbers<[1], [1], [0], [0], [0, 0, 1, 0], [], []>} : vector<8x32xbf16>, vector<8x32xbf16>, vector<8x8xf32> -> vector<8x8xf32>
    %cst_17 = arith.constant 0.176776692 : f32
    %23 = vector.broadcast %cst_17 : f32 to vector<8x8xf32>
    %24 = arith.mulf %22, %23 : vector<8x8xf32>
    %cst_18 = arith.constant dense<0xFF800000> : vector<8xf32>
    %25 = vector.multi_reduction <maximumf>, %24, %cst_18 [1] : vector<8x8xf32> to vector<8xf32>
    %26 = vector.shape_cast %25 : vector<8xf32> to vector<8x1xf32>
    %27 = vector.broadcast %26 : vector<8x1xf32> to vector<8x8xf32>
    %28 = arith.subf %24, %27 : vector<8x8xf32>
    %29 = math.exp %28 : vector<8x8xf32>
    %cst_19 = arith.constant dense<0.000000e+00> : vector<8xf32>
    %30 = vector.multi_reduction <add>, %29, %cst_19 [1] : vector<8x8xf32> to vector<8xf32>
    %31 = vector.shape_cast %30 : vector<8xf32> to vector<8x1xf32>
    %32 = tpu.reciprocal %31 {approx = true} : vector<8x1xf32> -> vector<8x1xf32>
    %33 = vector.broadcast %32 : vector<8x1xf32> to vector<8x8xf32>
    %34 = arith.mulf %29, %33 : vector<8x8xf32>
    %35 = arith.truncf %34 : vector<8x8xf32> to vector<8x8xbf16>
    %cst_20 = arith.constant dense<0.000000e+00> : vector<8x32xf32>
    %36 = tpu.matmul %35, %21, %cst_20 {dimension_numbers = #tpu.dot_dimension_numbers<[1], [0], [0], [1], [0, 0, 1, 1], [], []>} : vector<8x8xbf16>, vector<8x32xbf16>, vector<8x32xf32> -> vector<8x32xf32>
    %37 = arith.truncf %36 : vector<8x32xf32> to vector<8x32xbf16>
    %c0_21 = arith.constant 0 : index
    %c0_22 = arith.constant 0 : index
    %38 = vector.load %arg9[%c0_21, %c0_22] : memref<32x32xbf16, #tpu.memory_space<vmem>>, vector<32x32xbf16>
    %cst_23 = arith.constant dense<0.000000e+00> : vector<8x32xf32>
    %39 = tpu.matmul %37, %38, %cst_23 {dimension_numbers = #tpu.dot_dimension_numbers<[1], [0], [0], [1], [0, 0, 1, 1], [], []>} : vector<8x32xbf16>, vector<32x32xbf16>, vector<8x32xf32> -> vector<8x32xf32>
    %c0_24 = arith.constant 0 : index
    %c0_25 = arith.constant 0 : index
    %40 = vector.load %arg10[%c0_24, %c0_25] : memref<1x32xf32, #tpu.memory_space<vmem>>, vector<1x32xf32>
    %41 = vector.broadcast %40 : vector<1x32xf32> to vector<8x32xf32>
    %42 = arith.addf %39, %41 : vector<8x32xf32>
    %43 = arith.addf %1, %42 : vector<8x32xf32>
    %c0_26 = arith.constant 0 : index
    %c0_27 = arith.constant 0 : index
    %44 = vector.load %arg11[%c0_26, %c0_27] : memref<1x32xf32, #tpu.memory_space<vmem>>, vector<1x32xf32>
    %c0_28 = arith.constant 0 : index
    %c0_29 = arith.constant 0 : index
    %45 = vector.load %arg12[%c0_28, %c0_29] : memref<1x32xf32, #tpu.memory_space<vmem>>, vector<1x32xf32>
    %cst_30 = arith.constant dense<0.000000e+00> : vector<8xf32>
    %46 = vector.multi_reduction <add>, %43, %cst_30 [1] : vector<8x32xf32> to vector<8xf32>
    %47 = vector.shape_cast %46 : vector<8xf32> to vector<8x1xf32>
    %cst_31 = arith.constant 3.200000e+01 : f32
    %48 = vector.broadcast %cst_31 : f32 to vector<8x1xf32>
    %49 = arith.divf %47, %48 : vector<8x1xf32>
    %50 = vector.broadcast %49 : vector<8x1xf32> to vector<8x32xf32>
    %51 = arith.subf %43, %50 : vector<8x32xf32>
    %52 = arith.mulf %51, %51 : vector<8x32xf32>
    %cst_32 = arith.constant dense<0.000000e+00> : vector<8xf32>
    %53 = vector.multi_reduction <add>, %52, %cst_32 [1] : vector<8x32xf32> to vector<8xf32>
    %54 = vector.shape_cast %53 : vector<8xf32> to vector<8x1xf32>
    %cst_33 = arith.constant 3.200000e+01 : f32
    %55 = vector.broadcast %cst_33 : f32 to vector<8x1xf32>
    %56 = arith.divf %54, %55 : vector<8x1xf32>
    %57 = vector.broadcast %49 : vector<8x1xf32> to vector<8x32xf32>
    %58 = arith.subf %43, %57 : vector<8x32xf32>
    %cst_34 = arith.constant 9.99999974E-6 : f32
    %59 = vector.broadcast %cst_34 : f32 to vector<8x1xf32>
    %60 = arith.addf %56, %59 : vector<8x1xf32>
    %61 = math.rsqrt %60 : vector<8x1xf32>
    %62 = vector.broadcast %61 : vector<8x1xf32> to vector<8x32xf32>
    %63 = arith.mulf %58, %62 : vector<8x32xf32>
    %64 = vector.broadcast %44 : vector<1x32xf32> to vector<8x32xf32>
    %65 = arith.mulf %63, %64 : vector<8x32xf32>
    %66 = vector.broadcast %45 : vector<1x32xf32> to vector<8x32xf32>
    %67 = arith.addf %65, %66 : vector<8x32xf32>
    %68 = arith.truncf %67 : vector<8x32xf32> to vector<8x32xbf16>
    %c0_35 = arith.constant 0 : index
    %c0_36 = arith.constant 0 : index
    %69 = vector.load %arg13[%c0_35, %c0_36] : memref<32x128xbf16, #tpu.memory_space<vmem>>, vector<32x128xbf16>
    %cst_37 = arith.constant dense<0.000000e+00> : vector<8x128xf32>
    %70 = tpu.matmul %68, %69, %cst_37 {dimension_numbers = #tpu.dot_dimension_numbers<[1], [0], [0], [1], [0, 0, 1, 1], [], []>} : vector<8x32xbf16>, vector<32x128xbf16>, vector<8x128xf32> -> vector<8x128xf32>
    %c0_38 = arith.constant 0 : index
    %c0_39 = arith.constant 0 : index
    %71 = vector.load %arg14[%c0_38, %c0_39] : memref<1x128xf32, #tpu.memory_space<vmem>>, vector<1x128xf32>
    %72 = vector.broadcast %71 : vector<1x128xf32> to vector<8x128xf32>
    %73 = arith.addf %70, %72 : vector<8x128xf32>
    %cst_40 = arith.constant 5.000000e-01 : f32
    %74 = vector.broadcast %cst_40 : f32 to vector<8x128xf32>
    %75 = arith.mulf %74, %73 : vector<8x128xf32>
    %cst_41 = arith.constant 0.707106769 : f32
    %76 = vector.broadcast %cst_41 : f32 to vector<8x128xf32>
    %77 = arith.mulf %73, %76 : vector<8x128xf32>
    %78 = math.erf %77 : vector<8x128xf32>
    %cst_42 = arith.constant 1.000000e+00 : f32
    %79 = vector.broadcast %cst_42 : f32 to vector<8x128xf32>
    %80 = arith.addf %79, %78 : vector<8x128xf32>
    %81 = arith.mulf %75, %80 : vector<8x128xf32>
    %82 = arith.truncf %81 : vector<8x128xf32> to vector<8x128xbf16>
    %c0_43 = arith.constant 0 : index
    %c0_44 = arith.constant 0 : index
    %83 = vector.load %arg15[%c0_43, %c0_44] : memref<128x32xbf16, #tpu.memory_space<vmem>>, vector<128x32xbf16>
    %cst_45 = arith.constant dense<0.000000e+00> : vector<8x32xf32>
    %84 = tpu.matmul %82, %83, %cst_45 {dimension_numbers = #tpu.dot_dimension_numbers<[1], [0], [0], [1], [0, 0, 1, 1], [], []>} : vector<8x128xbf16>, vector<128x32xbf16>, vector<8x32xf32> -> vector<8x32xf32>
    %c0_46 = arith.constant 0 : index
    %c0_47 = arith.constant 0 : index
    %85 = vector.load %arg16[%c0_46, %c0_47] : memref<1x32xf32, #tpu.memory_space<vmem>>, vector<1x32xf32>
    %86 = vector.broadcast %85 : vector<1x32xf32> to vector<8x32xf32>
    %87 = arith.addf %84, %86 : vector<8x32xf32>
    %88 = arith.addf %67, %87 : vector<8x32xf32>
    %c0_48 = arith.constant 0 : index
    %c0_49 = arith.constant 0 : index
    %89 = vector.load %arg17[%c0_48, %c0_49] : memref<1x32xf32, #tpu.memory_space<vmem>>, vector<1x32xf32>
    %c0_50 = arith.constant 0 : index
    %c0_51 = arith.constant 0 : index
    %90 = vector.load %arg18[%c0_50, %c0_51] : memref<1x32xf32, #tpu.memory_space<vmem>>, vector<1x32xf32>
    %cst_52 = arith.constant dense<0.000000e+00> : vector<8xf32>
    %91 = vector.multi_reduction <add>, %88, %cst_52 [1] : vector<8x32xf32> to vector<8xf32>
    %92 = vector.shape_cast %91 : vector<8xf32> to vector<8x1xf32>
    %cst_53 = arith.constant 3.200000e+01 : f32
    %93 = vector.broadcast %cst_53 : f32 to vector<8x1xf32>
    %94 = arith.divf %92, %93 : vector<8x1xf32>
    %95 = vector.broadcast %94 : vector<8x1xf32> to vector<8x32xf32>
    %96 = arith.subf %88, %95 : vector<8x32xf32>
    %97 = arith.mulf %96, %96 : vector<8x32xf32>
    %cst_54 = arith.constant dense<0.000000e+00> : vector<8xf32>
    %98 = vector.multi_reduction <add>, %97, %cst_54 [1] : vector<8x32xf32> to vector<8xf32>
    %99 = vector.shape_cast %98 : vector<8xf32> to vector<8x1xf32>
    %cst_55 = arith.constant 3.200000e+01 : f32
    %100 = vector.broadcast %cst_55 : f32 to vector<8x1xf32>
    %101 = arith.divf %99, %100 : vector<8x1xf32>
    %102 = vector.broadcast %94 : vector<8x1xf32> to vector<8x32xf32>
    %103 = arith.subf %88, %102 : vector<8x32xf32>
    %cst_56 = arith.constant 9.99999974E-6 : f32
    %104 = vector.broadcast %cst_56 : f32 to vector<8x1xf32>
    %105 = arith.addf %101, %104 : vector<8x1xf32>
    %106 = math.rsqrt %105 : vector<8x1xf32>
    %107 = vector.broadcast %106 : vector<8x1xf32> to vector<8x32xf32>
    %108 = arith.mulf %103, %107 : vector<8x32xf32>
    %109 = vector.broadcast %89 : vector<1x32xf32> to vector<8x32xf32>
    %110 = arith.mulf %108, %109 : vector<8x32xf32>
    %111 = vector.broadcast %90 : vector<1x32xf32> to vector<8x32xf32>
    %112 = arith.addf %110, %111 : vector<8x32xf32>
    %c0_57 = arith.constant 0 : index
    %c0_58 = arith.constant 0 : index
    %c0_59 = arith.constant 0 : index
    %113 = vector.load %arg19[%c0_57, %c0_58, %c0_59] : memref<1x8x32xf32, #tpu.memory_space<vmem>>, vector<1x8x32xf32>
    %114 = vector.shape_cast %113 : vector<1x8x32xf32> to vector<8x32xf32>
    %115 = vector.shape_cast %112 : vector<8x32xf32> to vector<1x8x32xf32>
    tpu.vector_store %arg19[%c0_57, %c0_58, %c0_59], %115 {strides = array<i32>} : memref<1x8x32xf32, #tpu.memory_space<vmem>>, vector<1x8x32xf32>,
    return
  }
  func.func @transform_0(%arg0: i32, %arg1: i32) -> (i32, i32, i32) {
    %c0_i32 = arith.constant 0 : i32
    %c0_i32_0 = arith.constant 0 : i32
    %c0_i32_1 = arith.constant 0 : i32
    return %arg0, %c0_i32, %c0_i32_0 : i32, i32, i32
  }
  func.func @transform_1(%arg0: i32, %arg1: i32) -> (i32, i32) {
    %c0_i32 = arith.constant 0 : i32
    %c0_i32_0 = arith.constant 0 : i32
    %c0_i32_1 = arith.constant 0 : i32
    return %c0_i32, %c0_i32_0 : i32, i32
  }
  func.func @transform_2(%arg0: i32, %arg1: i32) -> (i32, i32) {
    %c0_i32 = arith.constant 0 : i32
    %c0_i32_0 = arith.constant 0 : i32
    %c0_i32_1 = arith.constant 0 : i32
    return %c0_i32, %c0_i32_0 : i32, i32
  }
  func.func @transform_3(%arg0: i32, %arg1: i32) -> (i32, i32) {
    %c0_i32 = arith.constant 0 : i32
    %c0_i32_0 = arith.constant 0 : i32
    %c0_i32_1 = arith.constant 0 : i32
    return %c0_i32, %c0_i32_0 : i32, i32
  }
  func.func @transform_4(%arg0: i32, %arg1: i32) -> (i32, i32) {
    %c0_i32 = arith.constant 0 : i32
    %c0_i32_0 = arith.constant 0 : i32
    %c0_i32_1 = arith.constant 0 : i32
    return %c0_i32, %c0_i32_0 : i32, i32
  }
  func.func @transform_5(%arg0: i32, %arg1: i32) -> (i32, i32) {
    %c0_i32 = arith.constant 0 : i32
    %c0_i32_0 = arith.constant 0 : i32
    %c0_i32_1 = arith.constant 0 : i32
    return %c0_i32, %c0_i32_0 : i32, i32
  }
  func.func @transform_6(%arg0: i32, %arg1: i32) -> (i32, i32) {
    %c0_i32 = arith.constant 0 : i32
    %c0_i32_0 = arith.constant 0 : i32
    %c0_i32_1 = arith.constant 0 : i32
    return %c0_i32, %c0_i32_0 : i32, i32
  }
  func.func @transform_7(%arg0: i32, %arg1: i32) -> (i32, i32) {
    %c0_i32 = arith.constant 0 : i32
    %c0_i32_0 = arith.constant 0 : i32
    %c0_i32_1 = arith.constant 0 : i32
    return %c0_i32, %c0_i32_0 : i32, i32
  }
  func.func @transform_8(%arg0: i32, %arg1: i32) -> (i32, i32) {
    %c0_i32 = arith.constant 0 : i32
    %c0_i32_0 = arith.constant 0 : i32
    %c0_i32_1 = arith.constant 0 : i32
    return %c0_i32, %c0_i32_0 : i32, i32
  }
  func.func @transform_9(%arg0: i32, %arg1: i32) -> (i32, i32) {
    %c0_i32 = arith.constant 0 : i32
    %c0_i32_0 = arith.constant 0 : i32
    %c0_i32_1 = arith.constant 0 : i32
    return %c0_i32, %c0_i32_0 : i32, i32
  }
  func.func @transform_10(%arg0: i32, %arg1: i32) -> (i32, i32) {
    %c0_i32 = arith.constant 0 : i32
    %c0_i32_0 = arith.constant 0 : i32
    %c0_i32_1 = arith.constant 0 : i32
    return %c0_i32, %c0_i32_0 : i32, i32
  }
  func.func @transform_11(%arg0: i32, %arg1: i32) -> (i32, i32) {
    %c0_i32 = arith.constant 0 : i32
    %c0_i32_0 = arith.constant 0 : i32
    %c0_i32_1 = arith.constant 0 : i32
    return %c0_i32, %c0_i32_0 : i32, i32
  }
  func.func @transform_12(%arg0: i32, %arg1: i32) -> (i32, i32) {
    %c0_i32 = arith.constant 0 : i32
    %c0_i32_0 = arith.constant 0 : i32
    %c0_i32_1 = arith.constant 0 : i32
    return %c0_i32, %c0_i32_0 : i32, i32
  }
  func.func @transform_13(%arg0: i32, %arg1: i32) -> (i32, i32) {
    %c0_i32 = arith.constant 0 : i32
    %c0_i32_0 = arith.constant 0 : i32
    %c0_i32_1 = arith.constant 0 : i32
    return %c0_i32, %c0_i32_0 : i32, i32
  }
  func.func @transform_14(%arg0: i32, %arg1: i32) -> (i32, i32) {
    %c0_i32 = arith.constant 0 : i32
    %c0_i32_0 = arith.constant 0 : i32
    %c0_i32_1 = arith.constant 0 : i32
    return %c0_i32, %c0_i32_0 : i32, i32
  }
  func.func @transform_15(%arg0: i32, %arg1: i32) -> (i32, i32) {
    %c0_i32 = arith.constant 0 : i32
    %c0_i32_0 = arith.constant 0 : i32
    %c0_i32_1 = arith.constant 0 : i32
    return %c0_i32, %c0_i32_0 : i32, i32
  }
  func.func @transform_16(%arg0: i32, %arg1: i32) -> (i32, i32) {
    %c0_i32 = arith.constant 0 : i32
    %c0_i32_0 = arith.constant 0 : i32
    %c0_i32_1 = arith.constant 0 : i32
    return %c0_i32, %c0_i32_0 : i32, i32
  }
  func.func @transform_17(%arg0: i32, %arg1: i32) -> (i32, i32, i32) {
    %c0_i32 = arith.constant 0 : i32
    %c0_i32_0 = arith.constant 0 : i32
    return %arg0, %arg1, %c0_i32 : i32, i32, i32
  }
}

</mosaic_0001>

<bundles_post_ra>
// kernel: tpu_custom_call.1
= control target key start
LH: loop header
LB: loop body
LE: loop exit
PB: predicated region body
PF: predicated region fallthrough
CT: control target
= control target key end

     0   :  { %s2202_s0 = inlined_call_operand.vmem [shape: f32[2,8,32], index: 0, kind: input, shape index: {}]   ;;  %s2203_s1 = inlined_call_operand.vmem [shape: bf16[32,32], index: 1, kind: input, shape index: {}]   ;;  %s2204_s2 = inlined_call_operand.vmem [shape: f32[1,32], index: 2, kind: input, shape index: {}]   ;;  %s2205_s3 = inlined_call_operand.vmem [shape: bf16[32,32], index: 3, kind: input, shape index: {}]   ;;  %s2206_s4 = inlined_call_operand.vmem [shape: f32[1,32], index: 4, kind: input, shape index: {}]   ;;  %s2207_s5 = inlined_call_operand.vmem [shape: bf16[32,32], index: 5, kind: input, shape index: {}]   ;;  %s2208_s6 = inlined_call_operand.hbm [shape: f32[1,32], index: 6, kind: input, shape index: {}]   ;;  %s2209_s7 = inlined_call_operand.vmem [shape: bf16[32,32], index: 7, kind: input, shape index: {}]   ;;  %s2210_s8 = inlined_call_operand.hbm [shape: f32[1,32], index: 8, kind: input, shape index: {}]   ;;  %s2211_s9 = inlined_call_operand.hbm [shape: f32[1,32], index: 9, kind: input, shape index: {}]   ;;  %s2212_s10 = inlined_call_operand.vmem [shape: f32[1,32], index: 10, kind: input, shape index: {}]   ;;  %s2213_s11 = inlined_call_operand.vmem [shape: bf16[32,128], index: 11, kind: input, shape index: {}]   ;;  %s2214_s12 = inlined_call_operand.vmem [shape: f32[1,128], index: 12, kind: input, shape index: {}]   ;;  %s2215_s13 = inlined_call_operand.vmem [shape: bf16[128,32], index: 13, kind: input, shape index: {}]   ;;  %s2216_s14 = inlined_call_operand.vmem [shape: f32[1,32], index: 14, kind: input, shape index: {}]   ;;  %s2217_s15 = inlined_call_operand.vmem [shape: f32[1,32], index: 15, kind: input, shape index: {}]   ;;  %s2218_s16 = inlined_call_operand.vmem [shape: f32[1,32], index: 16, kind: input, shape index: {}]   ;;  %s2219_s17 = inlined_call_operand.hbm [shape: f32[2,8,32], index: 17, kind: output, shape index: {}]  }
   0x1   :  { %2233 = sst [smem:[#allocation19_spill]] %s2202_s0 }
   0x2   :  { %2234 = sst [smem:[#allocation20_spill]] %s2203_s1 }
   0x3   :  { %2235 = sst [smem:[#allocation21_spill]] %s2210_s8 }
   0x4   :  { %2236 = sst [smem:[#allocation22_spill]] %s2217_s15 }
   0x5   :  { %2237 = sst [smem:[#allocation23_spill]] %s2218_s16 }
   0x6   :  { %2238 = sst [smem:[#allocation24_spill]] %s2219_s17 }
   0x7   :  { %22 = vsyncpa [#allocation3], 0 }
   0x8   :  { %23 = vsyncpa [#allocation6], 0 }
   0x9   :  { %24 = vsyncpa [#allocation4], 0 }
   0xa   :  { %26 = vsyncpa [#allocation4 + $0x1], 0  ;;  %s1865_s24 = smov 0   ;;  %s1867_s25 = smov 0  }
   0xb   :  { %s1869_s26 = smov 0   ;;  %s1871_s27 = smov 0  }
   0xc   :  { %s1873_s28 = smov 0   ;;  %s1875_s29 = smov 0  }
   0xd LB: > { %2239 = sst [smem:[#allocation12_spill]] %s1747_s24  ;;  %s1329_s0 = sadd.s32 4294967295, %s1767_s29   ;;  %s1767_s29 = sphi %s1875_s29, %s32_s29   ;;  %s1763_s28 = sphi %s1873_s28, %s2271_s28   ;;  %s1759_s27 = sphi %s1871_s27, %s2267_s27   ;;  %s1755_s26 = sphi %s1869_s26, %s2266_s26   ;;  %s1751_s25 = sphi %s1867_s25, %s2270_s25   ;;  %s1747_s24 = sphi %s1865_s24, %s2269_s24  }
   0xe   : > { %2240 = sst [smem:[#allocation13_spill]] %s1755_s26  ;;  %s1330_s30 = sadd.s32 4294967294, %s1767_s29  }
   0xf   : > { %2241 = sst [smem:[#allocation14_spill]] %s1763_s28  ;;  %s44_s18 = sadd.s32 1, %s1763_s28 }
  0x10   : > { %2242 = sst [smem:[#allocation15_spill]] %s1767_s29  ;;  %s415_s19 = sadd.s32 1, %s1755_s26 }
  0x11   : > { %p46_p0 = scmp.ge.s32.totalorder %s44_s18, 2  ;;  %p425_p1 = scmp.ne.s32.totalorder %s1755_s26, %s1751_s25 }
  0x12   : > { %p426_p2 = scmp.eq.s32.totalorder %s1329_s0, 1  ;;  %p431_p3 = scmp.ne.s32.totalorder %s1751_s25, %s1747_s24 }
  0x13   : > { %s2273_s18 = smov (%p46_p0, %s44_s18), 0  ;;  %p432_p5 = scmp.eq.s32.totalorder %s1330_s30, 1 }
  0x14   : > { %2243 = sst [smem:[#allocation16_spill]] %s2273_s18  ;;  %p1905_p4 = por %p426_p2, %p425_p1 }
  0x15   : > { %s410_s20 = ssub.s32 %s1763_s28, %s2273_s18  ;;  %p1331_p6 = scmp.ge.s32.totalorder %s1767_s29, 1 }
  0x16   : > { %s2244_s1 = scalar_select %p1905_p4, 1, 0 }
  0x17   : > { %p413_p7 = scmp.eq.s32.totalorder %s410_s20, 0  ;;  %p1912_p8 = por %p432_p5, %p431_p3 }
  0x18   : > { %p439_p9 = scmp.lt.s32.totalorder %s1767_s29, 3  ;;  %p1924_p11 = scmp.eq.s32.totalorder %s1329_s0, 0 }
  0x19   : > { %s2245_s21 = scalar_select %p1912_p8, 1, 0 }
  0x1a   : > { %s1918_s22 = scalar_select %p413_p7, %s1755_s26, %s415_s19  }
  0x1b   : > { %2246 = sst [smem:[#allocation17_spill]] %s2245_s21  ;;  %p1920_p10 = pnand %p1331_p6, %p439_p9 }
  0x1c   : > { %2247 = sst [smem:[#allocation18_spill]] %s1918_s22  ;;  %s1769_s30 = smov [#allocation5]  }
  0x1d   : > { %s2248_s23 = scalar_select %p1920_p10, 1, 0 }
  0x1e   : > { %s2249_s24 = scalar_select %p1924_p11, 1, 0 }
  0x1f   : > { %p1495_p12 = pneg %p1920_p10  ;;  %s481_s20 = sshll.u32 %s1769_s30, 4  ;;  %s482_s20 = int_to_ptr.vmem [resolvable:$true] %s481_s20 }
  0x20   : > { %s1770_s19 = smov [#allocation2]   ;;  %s2251_s8 = sld [smem:[#allocation21_spill]] }
  0x21   : > { %p1932_p13 = pnand %p1924_p11, %p1495_p12  ;;  %s467_s28 = sshll.u32 %s1770_s19, 4  ;;  %s1936_s28 = int_to_ptr.vmem [resolvable:$true] %s467_s28 }
  0x23   : > { %p1946_p1 = pneg %p1932_p13 }
  0x26   : > { %s1597_s26 = scalar_lea.hbm %s2251_s8, 16 }
  0x27   : > { %p1598_p0 = scmp.ne.s32.totalorder %s2251_s8, %s1597_s26  ;;  %p1604_p5 = scmp.lt.u32.totalorder %s1597_s26, %s2251_s8 }
  0x29   : > { %p1600_p2 = pnand %p1946_p1, %p1598_p0 }
  0x2b   : > { %p1601_p3 = pneg %p1600_p2 }
  0x2d   : > { %p1606_p6 = pnand %p1604_p5, %p1601_p3 }
  0x2f   : > { %1609 = shalt.err (!%p1606_p6)
}
  0x30   : > { %s1610_s22 = scalar_lea.vmem %s482_s20, 16  ;;  %s1617_s29 = scalar_lea.vmem %s482_s20, 32 }
  0x31   : > { %p1611_p7 = scmp.ne.s32.totalorder %s482_s20, %s1610_s22  ;;  %p1618_p8 = scmp.lt.s32.totalorder %s482_s20, %s482_s20 }
  0x32   : > { %p1619_p4 = scmp.lt.s32.totalorder %s1617_s29, %s1610_s22 }
  0x33   : > { %p1613_p9 = pnand %p1611_p7, %p1946_p1 }
  0x34   : > { %p1620_p11 = por %p1619_p4, %p1618_p8 }
  0x35   : > { %p1614_p12 = pneg %p1613_p9 }
  0x37   : > { %p1621_p10 = pnand %p1620_p11, %p1614_p12 }
  0x39   : > { %1624 = shalt.err (!%p1621_p10)
}
  0x3a   : > { %1501 = dma.hbm_to_vmem [thread:$0]  (!%p1932_p13), %s2251_s8, 16, %s482_s20, [#allocation6]  }
  0x3b   : > { %s1625_s19 = scalar_lea.hbm %s2208_s6, 16 }
  0x3c   : > { %p1626_p0 = scmp.ne.s32.totalorder %s2208_s6, %s1625_s19  ;;  %p1632_p8 = scmp.lt.u32.totalorder %s1625_s19, %s2208_s6 }
  0x3e   : > { %p1628_p2 = pnand %p1626_p0, %p1946_p1 }
  0x40   : > { %p1629_p4 = pneg %p1628_p2 }
  0x42   : > { %p1634_p10 = pnand %p1632_p8, %p1629_p4 }
  0x44   : > { %1637 = shalt.err (!%p1634_p10)
}
  0x45   : > { %s1638_s20 = scalar_lea.vmem %s1936_s28, 16  ;;  %s1645_s15 = scalar_lea.vmem %s1936_s28, 32 }
  0x46   : > { %p1639_p11 = scmp.ne.s32.totalorder %s1936_s28, %s1638_s20  ;;  %p1646_p6 = scmp.lt.s32.totalorder %s1936_s28, %s1936_s28 }
  0x47   : > { %p1647_p7 = scmp.lt.s32.totalorder %s1645_s15, %s1638_s20 }
  0x48   : > { %p1641_p3 = pnand %p1639_p11, %p1946_p1 }
  0x49   : > { %p1648_p9 = por %p1647_p7, %p1646_p6 }
  0x4a   : > { %p1642_p5 = pneg %p1641_p3 }
  0x4c   : > { %p1649_p12 = pnand %p1648_p9, %p1642_p5 }
  0x4e   : > { %1652 = shalt.err (!%p1649_p12)
}
  0x4f   : > { %1498 = dma.hbm_to_vmem [thread:$0]  (!%p1932_p13), %s2208_s6, 16, %s1936_s28, [#allocation3]  }
  0x50   : > { %s1771_s0 = smov [#allocation7]   ;;  %s1653_s22 = scalar_lea.hbm %s2211_s9, 16 }
  0x51   : > { %s492_s17 = sshll.u32 %s1771_s0, 4  ;;  %p1654_p0 = scmp.ne.s32.totalorder %s2211_s9, %s1653_s22  ;;  %s493_s17 = int_to_ptr.vmem [resolvable:$true] %s492_s17 }
  0x52   : > { %p1660_p8 = scmp.lt.u32.totalorder %s1653_s22, %s2211_s9 }
  0x53   : > { %p1656_p2 = pnand %p1654_p0, %p1946_p1 }
  0x55   : > { %p1657_p4 = pneg %p1656_p2 }
  0x57   : > { %p1662_p10 = pnand %p1660_p8, %p1657_p4 }
  0x59   : > { %1665 = shalt.err (!%p1662_p10)
}
  0x5a   : > { %s1666_s28 = scalar_lea.vmem %s493_s17, 16  ;;  %s1673_s16 = scalar_lea.vmem %s493_s17, 32 }
  0x5b   : > { %p1667_p11 = scmp.ne.s32.totalorder %s493_s17, %s1666_s28  ;;  %p1674_p6 = scmp.lt.s32.totalorder %s493_s17, %s493_s17 }
  0x5c   : > { %p1675_p7 = scmp.lt.s32.totalorder %s1673_s16, %s1666_s28 }
  0x5d   : > { %p1669_p3 = pnand %p1667_p11, %p1946_p1 }
  0x5e   : > { %p1676_p9 = por %p1675_p7, %p1674_p6 }
  0x5f   : > { %p1670_p5 = pneg %p1669_p3 }
  0x61   : > { %p1677_p12 = pnand %p1676_p9, %p1670_p5 }
  0x63   : > { %1680 = shalt.err (!%p1677_p12)
}
  0x64   : > { %1504 = dma.hbm_to_vmem [thread:$0]  (!%p1932_p13), %s2211_s9, 16, %s493_s17, [#allocation6]  }
  0x65   : > { %p2253_p0 = scmp.ne.s32.totalorder %s2248_s23, 0 }
  0x66   : > { %p2254_p2 = scmp.ne.s32.totalorder (!%p2253_p0), %s2249_s24, 0 }
  0x67   : > { %533 = sbr.rel (%p2253_p0) target bundleno = 2411 (0x96b), region = 88 }
  0x6e   : > { %1734 = dma.done.wait (%p2254_p2), [#allocation3], 16  }
  0x6f   : > { %1736 = vsyncadd (%p2254_p2), [#allocation3], 4294967280 }
  0x70   : > { %1738 = dma.done.wait (%p2254_p2), [#allocation6], 32  }
  0x71   : > { %1740 = vsyncadd (%p2254_p2), [#allocation6], 4294967264  ;;  %p592_p1 = scmp.lt.s32.totalorder %s1759_s27, 1  ;;  %v1772_v0 = vmov 0.0   ;;  %vm1773_vm0 = vmmov 0   ;;  %s2255_s30 = sld [smem:[#allocation19_spill]] }
  0x72   : > { %1409 = vmatprep.subr.bf16.mxu0 %v1772_v0  ;;  %1413 = vmatprep.mubr.msk.bf16.mxu0 %vm1773_vm0, %v1772_v0  ;;  %s2256_s22 = sld [smem:[#allocation20_spill]]  ;;  %vm622_vm1 = vcmask 261120   ;;  %v1571_v4 = vld [vmem:[%s2205_s3] sm:$0xff]   ;;  %v1572_v6 = vld [vmem:[%s2205_s3 + $0x8] sm:$0xff]   ;;  %vm842_vm2 = vcmask 64512   ;;  %vm858_vm3 = vcmask 1043456  }
  0x73   : > { %s593_s8 = scalar_select %p592_p1, %s1759_s27, 1  ;;  %1433 = vmatprep.subr.bf16.mxu1 %v1772_v0  ;;  %1435 = vmatprep.mubr.msk.bf16.mxu1 %vm1773_vm0, %v1772_v0  ;;  %v1346_v11 = vld [vmem:[%s2206_s4] ss:$0 sm:$0xff]  ;;  %v1574_v23 = vld [vmem:[%s2207_s5 + $0x8] sm:$0xff]   ;;  %v1356_v54 = vld [vmem:[#allocation5] ss:$0 sm:$0xff] }
  0x74   : > { %v1342_v18 = vld [vmem:[%s2204_s2] ss:$0 sm:$0xff]  ;;  %v1576_v48 = vld [vmem:[%s2209_s7 + $0x8] sm:$0xff]   ;;  %s589_s19 = sand.u32 1, %s1751_s25   ;;  %s2257_s28 = sld [smem:[#allocation22_spill]] }
  0x75   : > { %s1341_s18 = sshll.u32 %s593_s8, 3  ;;  %v1573_v22 = vld [vmem:[%s2207_s5] sm:$0xff]   ;;  %s1340_s29 = sshll.u32 %s589_s19, 3 }
  0x76   : > { %v1350_v38 = vld [vmem:[#allocation2] ss:$0 sm:$0xff]  ;;  %s2258_s0 = sld [smem:[#allocation23_spill]]  ;;  %s1378_s8 = sshll.u32 %s1759_s27, 7 }
  0x77   : > { %s595_s17 = scalar_lea.vmem %s2255_s30, %s1341_s18  ;;  %v1575_v43 = vld [vmem:[%s2209_s7] sm:$0xff]   ;;  %s591_s18 = scalar_lea.vmem [#allocation8], %s1340_s29 }
  0x78   : > { %v1569_v1 = vld [vmem:[%s2256_s22] sm:$0xff]   ;;  %v1570_v2 = vld [vmem:[%s2256_s22 + $0x8] sm:$0xff]   ;;  %s1230_s23 = sshll.u32 %s591_s18, 4  ;;  %s1216_s20 = scalar_lea.sflag [#allocation4], %s589_s19  ;;  %s2156_s23 = int_to_ptr.vmem [resolvable:$true] %s1230_s23 }
  0x79   : > { %1410 = vmatpush3.bf16.msra.mxu0 %v1569_v1  ;;  %v2031_v3 = vld [vmem:[%s595_s17] sm:$0xff]  ;;  %s2259_s17 = sld [smem:[#allocation24_spill]]  ;;  %s1681_s15 = scalar_lea.vmem %s2156_s23, 128 }
  0x7a   : > { %1411 = vmatprep.subr.bf16.mxu0 %v1772_v0  ;;  %v598_v5 = vpack.c.bf16 %v2031_v3, %v2031_v3  ;;  %p1682_p13 = scmp.ne.s32.totalorder %s2156_s23, %s1681_s15  ;;  %p2260_p4 = scmp.ne.s32.totalorder %s2244_s1, 0 }
  0x7b   : > { %s1774_s27 = smov [#allocation8]  }
  0x7c   : > { %p1683_p8 = pnand %p1682_p13, %p2260_p4  ;;  %s1685_s29 = sshll.u32 %s1774_s27, 4  ;;  %s1686_s29 = int_to_ptr.vmem [resolvable:$false] %s1685_s29 }
  0x7d   : > { %1412 = vmatpush3.bf16.msra.mxu0 %v1570_v2  ;;  %p1688_p11 = scmp.lt.s32.totalorder %s2156_s23, %s1686_s29 }
  0x7e   : > { %1417 = vmatprep.subr.bf16.mxu0 %v1772_v0  ;;  %p1684_p10 = pneg %p1683_p8 }
  0x7f   : > { %s2154_s26 = scalar_lea.hbm %s2259_s17, %s1378_s8 }
  0x80   : > { %1414 = vmatmul.mubr.msk.bf16.vlgmr.msra.gmra.mrb[0].mxu0 %vm622_vm1, %v598_v5 }
  0x81   : > { %1418 = vmatpush3.bf16.msra.mxu0 %v1571_v4  ;;  %1421 = vmatprep.mubr.msk.bf16.mxu0 %vm1773_vm0, %v1772_v0 }
  0x82   : > { %1419 = vmatprep.subr.bf16.mxu0 %v1772_v0 }
  0x85   : > { %1420 = vmatpush3.bf16.msra.mxu0 %v1572_v6  ;;  %v1579_v6 = vld [vmem:[%s2215_s13] sm:$0xff]  }
  0x86   : > { %1425 = vmatprep.subr.bf16.mxu0 %v1772_v0 }
  0x88   : > { %1422 = vmatmul.mubr.msk.bf16.vlgmr.msra.gmra.mrb[4].mxu0 %vm622_vm1, %v598_v5 }
  0x89   : > { %1429 = vmatprep.mubr.msk.bf16.mxu0 %vm1773_vm0, %v1772_v0  ;;  %1426 = vmatpush3.bf16.msra.mxu0 %v1573_v22  ;;  %v1585_v22 = vld [vmem:[%s2215_s13 + $0x30] sm:$0xff]  }
  0x8a   : > { %1427 = vmatprep.subr.bf16.mxu0 %v1772_v0 }
  0x8d   : > { %1428 = vmatpush3.bf16.msra.mxu0 %v1574_v23  ;;  %v1586_v23 = vld [vmem:[%s2215_s13 + $0x38] sm:$0xff]  }
  0x8e   : > { %1439 = vmatprep.subr.bf16.mxu0 %v1772_v0 }
  0x90   : > { %1430 = vmatmul.mubr.msk.bf16.vlgmr.msra.gmra.mrb[8].mxu0 %vm622_vm1, %v598_v5  ;;  %v1577_v5 = vld [vmem:[%s2213_s11] sm:$0xff]  }
  0x91   : > { %1441 = vmatprep.mubr.msk.bf16.mxu0 %vm1773_vm0, %v1772_v0 }
 0x153   : > { %v660_v7 = vpop.f32.mrb[0].mxu0 }
 0x154   : > { %v1415_v8 = vpop.f32.mrb[1].mxu0  ;;  %v661_v20 = vadd.f32 %v1342_v18, %v660_v7  ;;  %v1580_v7 = vld [vmem:[%s2215_s13 + $0x8] sm:$0xff]  }
 0x155   : > { %v663_v9 = vpop.f32.mrb[2].mxu0  ;;  %v1581_v8 = vld [vmem:[%s2215_s13 + $0x10] sm:$0xff]  }
 0x156   : > { %v1416_v10 = vpop.f32.mrb[3].mxu0  ;;  %v792_v21 = vpack.c.bf16 %v661_v20, %v661_v20  ;;  %v1583_v20 = vld [vmem:[%s2215_s13 + $0x20] sm:$0xff]  }
 0x15b   : > { %v723_v12 = vpop.f32.mrb[4].mxu0 }
 0x15c   : > { %v724_v13 = vadd.f32 %v1346_v11, %v723_v12  ;;  %v1423_v14 = vpop.f32.mrb[5].mxu0 }
 0x15d   : > { %v726_v15 = vpop.f32.mrb[6].mxu0 }
 0x15e   : > { %v793_v16 = vpack.c.bf16 %v724_v13, %v724_v13  ;;  %v1424_v17 = vpop.f32.mrb[7].mxu0  ;;  %v1360_v13 = vld [vmem:[#allocation7] ss:$0 sm:$0xff]  ;;  %v1361_v15 = vld [vmem:[%s2212_s10] ss:$0 sm:$0xff] }
 0x160   : > { %v799_v19 = vsel %vm622_vm1, %v793_v16, 0 }
 0x161   : > { %1434 = vmatpush3.bf16.xpose.msra.mxu1 %v799_v19  ;;  %v1582_v19 = vld [vmem:[%s2215_s13 + $0x18] sm:$0xff]  }
 0x162   : > { %1445 = vmatprep.subr.bf16.mxu1 %v1772_v0 }
 0x163   : > { %v786_v35 = vpop.f32.mrb[8].mxu0 }
 0x164   : > { %v1431_v36 = vpop.f32.mrb[9].mxu0  ;;  %v787_v40 = vadd.f32 %v1350_v38, %v786_v35  ;;  %v1366_v35 = vld [vmem:[%s2216_s14] ss:$0 sm:$0xff] }
 0x165   : > { %v789_v37 = vpop.f32.mrb[10].mxu0 }
 0x166   : > { %v1432_v39 = vpop.f32.mrb[11].mxu0  ;;  %v794_v41 = vpack.c.bf16 %v787_v40, %v787_v40 }
 0x168   : > { %1436 = vmatmul.mubr.msk.bf16.vlgmr.msra.gmra.mrb[0].mxu1 %vm622_vm1, %v792_v21  ;;  %v860_v42 = vsel %vm858_vm3, %v794_v41, 0  ;;  %v1584_v21 = vld [vmem:[%s2215_s13 + $0x28] sm:$0xff]  }
 0x169   : > { %1449 = vmatprep.mubr.msk.bf16.mxu1 %vm1773_vm0, %v1772_v0  ;;  %1440 = vmatpush3.bf16.msra.mxu0 %v860_v42 }
 0x16a   : > { %1453 = vmatprep.subr.bf16.mxu0 %v1772_v0  ;;  %1446 = vmatpush3.bf16.msra.mxu1 %v1575_v43 }
 0x16b   : > { %1447 = vmatprep.subr.bf16.mxu1 %v1772_v0 }
 0x16e   : > { %1448 = vmatpush3.bf16.msra.mxu1 %v1576_v48 }
 0x16f   : > { %1461 = vmatprep.subr.bf16.mxu1 %v1772_v0 }
 0x23b   : > { %v835_v24 = vpop.f32.mrb[0].mxu1 }
 0x23c   : > { %v841_v25 = vmul.f32 0.17677669, %v835_v24  ;;  %v1437_v26 = vpop.f32.mrb[1].mxu1  ;;  %v1362_v24 = vld [vmem:[%s2214_s12] ss:$0 sm:$0xff] }
 0x23d   : > { %v838_v27 = vpop.f32.mrb[2].mxu1 }
 0x23e   : > { %v1438_v28 = vpop.f32.mrb[3].mxu1  ;;  %v843_v29 = vsel %vm842_vm2, %v841_v25, -inf }
 0x23f   : > { %844 = vmax.xlane.f32.xlu0 %v843_v29 }
 0x2cc   : > { %v845_v30 = vpop.xlane.xlu0 %844 }
 0x2cd   : > { %v846_v31 = vsub.f32 %v841_v25, %v845_v30 }
 0x2cf   : > { %v847_v32 = vmul.f32 1.442695, %v846_v31 }
 0x2d1   : > { %1587 = vpow2.f32 %v847_v32 }
 0x2db   : > { %v1588_v33 = vpop.eup %1587 }
 0x2dc   : > { %v849_v34 = vsel %vm842_vm2, %v1588_v33, 0.0 }
 0x2dd   : > { %850 = vadd.xlane.f32.xlu0 %v849_v34 }
 0x36a   : > { %v851_v44 = vpop.xlane.xlu0 %850 }
 0x36b   : > { %1589 = vrcp.f32 %v851_v44 }
 0x375   : > { %v1590_v45 = vpop.eup %1589 }
 0x376   : > { %v853_v46 = vmul.f32 %v1590_v45, %v1588_v33 }
 0x378   : > { %v854_v47 = vpack.c.bf16 %v853_v46, %v853_v46 }
 0x37a   : > { %1442 = vmatmul.mubr.msk.bf16.vlgmr.msra.gmra.mrb[12].mxu0 %vm842_vm2, %v854_v47 }
 0x37b   : > { %1457 = vmatprep.mubr.msk.bf16.mxu0 %vm1773_vm0, %v1772_v0  ;;  %1454 = vmatpush3.bf16.msra.mxu0 %v1577_v5 }
 0x37c   : > { %1455 = vmatprep.subr.bf16.mxu0 %v1772_v0 }
 0x44d   : > { %v896_v49 = vpop.f32.mrb[12].mxu0 }
 0x44e   : > { %v902_v50 = vpack.c.bf16 %v896_v49, %v896_v49  ;;  %v1443_v51 = vpop.f32.mrb[13].mxu0 }
 0x44f   : > { %v899_v52 = vpop.f32.mrb[14].mxu0 }
 0x450   : > { %v1444_v53 = vpop.f32.mrb[15].mxu0  ;;  %1450 = vmatmul.mubr.msk.bf16.vlgmr.msra.gmra.mrb[4].mxu1 %vm622_vm1, %v902_v50  ;;  %v1375_v52 = vld [vmem:[%s2257_s28] ss:$0 sm:$0xff]  ;;  %s1687_s28 = scalar_lea.vmem %s1686_s29, 256 }
 0x451   : > { %1477 = vmatprep.mubr.msk.bf16.mxu1 %vm1773_vm0, %v1772_v0  ;;  %1462 = vmatpush3.bf16.msra.mxu1 %v1579_v6  ;;  %p1689_p3 = scmp.lt.s32.totalorder %s1687_s28, %s1681_s15 }
 0x452   : > { %1463 = vmatprep.subr.bf16.mxu1 %v1772_v0 }
 0x453   : > { %p1690_p5 = por %p1689_p3, %p1688_p11 }
 0x455   : > { %1464 = vmatpush3.bf16.msra.mxu1 %v1580_v7  ;;  %p1691_p6 = pnand %p1690_p5, %p1684_p10 }
 0x456   : > { %1465 = vmatprep.subr.bf16.mxu1 %v1772_v0 }
 0x459   : > { %1466 = vmatpush3.bf16.msra.mxu1 %v1581_v8 }
 0x45a   : > { %1467 = vmatprep.subr.bf16.mxu1 %v1772_v0 }
 0x45d   : > { %1468 = vmatpush3.bf16.msra.mxu1 %v1582_v19 }
 0x45e   : > { %1469 = vmatprep.subr.bf16.mxu1 %v1772_v0 }
 0x461   : > { %1470 = vmatpush3.bf16.msra.mxu1 %v1583_v20 }
 0x462   : > { %1471 = vmatprep.subr.bf16.mxu1 %v1772_v0 }
 0x465   : > { %1472 = vmatpush3.bf16.msra.mxu1 %v1584_v21 }
 0x466   : > { %1473 = vmatprep.subr.bf16.mxu1 %v1772_v0 }
 0x469   : > { %1474 = vmatpush3.bf16.msra.mxu1 %v1585_v22 }
 0x46a   : > { %1475 = vmatprep.subr.bf16.mxu1 %v1772_v0 }
 0x46d   : > { %1476 = vmatpush3.bf16.msra.mxu1 %v1586_v23 }
 0x523   : > { %v963_v55 = vpop.f32.mrb[4].mxu1 }
 0x524   : > { %v964_v56 = vadd.f32 %v1356_v54, %v963_v55  ;;  %v1451_v57 = vpop.f32.mrb[5].mxu1  ;;  %v1376_v54 = vld [vmem:[%s2258_s0] ss:$0 sm:$0xff] }
 0x525   : > { %v966_v58 = vpop.f32.mrb[6].mxu1 }
 0x526   : > { %v1452_v59 = vpop.f32.mrb[7].mxu1  ;;  %v969_v60 = vadd.f32 %v964_v56, %v2031_v3  ;;  %v1578_v3 = vld [vmem:[%s2213_s11 + $0x8] sm:$0xff]  }
 0x527   : > { %1456 = vmatpush3.bf16.msra.mxu0 %v1578_v3 }
 0x528   : > { %v972_v61 = vsel %vm622_vm1, %v969_v60, 0.0 }
 0x529   : > { %973 = vadd.xlane.f32.xlu1 %v972_v61 }
 0x5b6   : > { %v974_v62 = vpop.xlane.xlu1 %973 }
 0x5b7   : > { %v976_v63 = vmul.f32 0.03125, %v974_v62 }
 0x5b9   : > { %v977_v1 = vsub.f32 %v969_v60, %v976_v63 }
 0x5bb   : > { %v978_v2 = vmul.f32 %v977_v1, %v977_v1 }
 0x5bd   : > { %v979_v4 = vsel %vm622_vm1, %v978_v2, 0.0 }
 0x5be   : > { %980 = vadd.xlane.f32.xlu1 %v979_v4 }
 0x64b   : > { %v981_v9 = vpop.xlane.xlu1 %980 }
 0x64c   : > { %v982_v10 = vmul.f32 0.03125, %v981_v9 }
 0x64e   : > { %v983_v11 = vadd.f32 1e-05, %v982_v10 }
 0x650   : > { %1591 = vrsqrt.f32 %v983_v11 }
 0x65a   : > { %v1592_v12 = vpop.eup %1591 }
 0x65b   : > { %v985_v14 = vmul.f32 %v1592_v12, %v977_v1 }
 0x65d   : > { %v992_v16 = vmul.f32 %v1360_v13, %v985_v14 }
 0x65f   : > { %v999_v17 = vadd.f32 %v1361_v15, %v992_v16 }
 0x661   : > { %v1000_v18 = vpack.c.bf16 %v999_v17, %v999_v17 }
 0x663   : > { %1458 = vmatmul.mubr.msk.bf16.vlgmr.msra.gmra.mrb[16].mxu0 %vm622_vm1, %v1000_v18 }
 0x736   : > { %v1061_v25 = vpop.f32.mrb[16].mxu0 }
 0x737   : > { %v1062_v26 = vadd.f32 %v1362_v24, %v1061_v25  ;;  %v1459_v27 = vpop.f32.mrb[17].mxu0 }
 0x738   : > { %v1064_v28 = vpop.f32.mrb[18].mxu0 }
 0x739   : > { %v1068_v29 = vmul.f32 0.70710677, %v1062_v26  ;;  %v1460_v30 = vpop.f32.mrb[19].mxu0  ;;  %v1067_v32 = vmul.f32 0.5, %v1062_v26 }
 0x73b   : > { %1593 = verf.f32 %v1068_v29 }
 0x745   : > { %v1594_v31 = vpop.eup %1593 }
 0x746   : > { %v1070_v33 = vadd.f32 1.0, %v1594_v31 }
 0x748   : > { %v1071_v0 = vmul.f32 %v1070_v33, %v1067_v32 }
 0x74a   : > { %v1072_v34 = vpack.c.bf16 %v1071_v0, %v1071_v0 }
 0x74c   : > { %1478 = vmatmul.mubr.bf16.vlgmr.msra.gmra.mrb[8].mxu1 %v1072_v34 }
 0x81f   : > { %v1178_v36 = vpop.f32.mrb[8].mxu1 }
 0x820   : > { %v1179_v37 = vadd.f32 %v1366_v35, %v1178_v36  ;;  %v1479_v38 = vpop.f32.mrb[9].mxu1 }
 0x821   : > { %v1181_v39 = vpop.f32.mrb[10].mxu1 }
 0x822   : > { %v1480_v40 = vpop.f32.mrb[11].mxu1  ;;  %v1184_v41 = vadd.f32 %v1179_v37, %v999_v17 }
 0x824   : > { %v1187_v42 = vsel %vm622_vm1, %v1184_v41, 0.0 }
 0x825   : > { %1188 = vadd.xlane.f32.xlu0 %v1187_v42 }
 0x8b2   : > { %v1189_v43 = vpop.xlane.xlu0 %1188 }
 0x8b3   : > { %v1190_v44 = vmul.f32 0.03125, %v1189_v43 }
 0x8b5   : > { %v1191_v45 = vsub.f32 %v1184_v41, %v1190_v44 }
 0x8b7   : > { %v1192_v46 = vmul.f32 %v1191_v45, %v1191_v45 }
 0x8b9   : > { %v1193_v47 = vsel %vm622_vm1, %v1192_v46, 0.0 }
 0x8ba   : > { %1194 = vadd.xlane.f32.xlu1 %v1193_v47 }
 0x947   : > { %v1195_v48 = vpop.xlane.xlu1 %1194 }
 0x948   : > { %v1196_v49 = vmul.f32 0.03125, %v1195_v48 }
 0x94a   : > { %v1197_v50 = vadd.f32 1e-05, %v1196_v49 }
 0x94c   : > { %1595 = vrsqrt.f32 %v1197_v50 }
 0x956   : > { %v1596_v51 = vpop.eup %1595 }
 0x957   : > { %v1199_v53 = vmul.f32 %v1596_v51, %v1191_v45 }
 0x959   : > { %v1206_v55 = vmul.f32 %v1375_v52, %v1199_v53 }
 0x95b   : > { %v1213_v56 = vadd.f32 %v1376_v54, %v1206_v55 }
 0x95d   : > { %1214 = vst.msk [vmem:[%s591_s18] sm:$0xff] %vm622_vm1, %v1213_v56 }
 0x95e   : > { %1694 = shalt.err (!%p1691_p6)
}
 0x95f   : > { %s1695_s19 = scalar_lea.hbm %s2154_s26, 128  ;;  %s1699_s0 = scalar_lea.hbm %s2259_s17, 256 }
 0x960   : > { %p1696_p7 = scmp.ne.s32.totalorder %s2154_s26, %s1695_s19  ;;  %p1700_p0 = scmp.lt.u32.totalorder %s2154_s26, %s2259_s17 }
 0x961   : > { %p1701_p2 = scmp.lt.u32.totalorder %s1699_s0, %s1695_s19  ;;  %p1703_p13 = scmp.lt.u32.totalorder %s1695_s19, %s2154_s26 }
 0x962   : > { %p1697_p9 = pnand %p1696_p7, %p2260_p4 }
 0x963   : > { %p1702_p1 = por %p1701_p2, %p1700_p0 }
 0x964   : > { %p1698_p12 = pneg %p1697_p9 }
 0x965   : > { %p1704_p8 = por %p1703_p13, %p1702_p1 }
 0x967   : > { %p1705_p10 = pnand %p1704_p8, %p1698_p12 }
 0x969   : > { %1708 = shalt.err (!%p1705_p10)
}
 0x96a   : > { %1493 = dma.vmem_to_hbm [thread:$0]  (%p2260_p4), %s2156_s23, 128, %s2154_s26, %s1216_s20  }
 0x96b PF: > { %s2261_s24 = sld [smem:[#allocation15_spill]]  ;;  %s2262_s30 = sld [smem:[#allocation12_spill]] }
 0x96c   : > { %s2263_s15 = sld [smem:[#allocation17_spill]] }
 0x971   : > { %p1515_p11 = scmp.ge.s32.totalorder %s2261_s24, 2  ;;  %s1242_s27 = sand.u32 1, %s2262_s30  }
 0x972   : > { %p2264_p3 = scmp.ne.s32.totalorder %s2263_s15, 0  ;;  %s1243_s29 = scalar_lea.sflag [#allocation4], %s1242_s27 }
 0x974   : > { %p1506_p5 = pnand %p1515_p11, %p2264_p3 }
 0x976   : > { %1742 = dma.done.wait (!%p1506_p5), %s1243_s29, 128  }
 0x977   : > { %1744 = vsyncadd (!%p1506_p5), %s1243_s29, 4294967168  ;;  %s32_s29 = sadd.s32 1, %s2261_s24   ;;  %s2265_s28 = sld [smem:[#allocation13_spill]] }
 0x978   : > { %p29_p6 = scmp.ge.s32.totalorder %s32_s29, 4   ;;  %s2266_s26 = sld [smem:[#allocation18_spill]] }
 0x979   : > { %s2267_s27 = sld [smem:[#allocation14_spill]]  ;;  %s2268_s1 = sld [smem:[#allocation16_spill]] }
 0x97a   : > { %s2269_s24 = smov %s1751_s25  ;;  %31 = sbr.rel (!%p29_p6) target bundleno = 13 (0xd), region = 136 }
 0x97d   : > { %s2270_s25 = smov %s2265_s28 }
 0x97f   : > { %s2271_s28 = smov %s2268_s1 }
 0x981   :  { %1248 = vsyncpa [#allocation3], 1 }
 0x982   :  { %1250 = vsyncpa [#allocation3 + $0x1], 1 }
 0x983   :  { %1251 = vsyncpa [#allocation6], 1 }
 0x984   :  { %1252 = vsyncpa [#allocation4], 1 }
 0x985   :  { %1254 = vsyncpa [#allocation4 + $0x1], 1 }

</bundles_post_ra>
